<compile_context>
chip_gen: v7x
topology: tpu7x:2x2x1
jax: 0.10.0
libtpu: 0.0.40
codegen_flags: <defaults>
</compile_context>

<pallas_src>
import functools

import jax
import jax.numpy as jnp
from jax import lax
from jax.experimental import pallas as pl
from jax.experimental.pallas import tpu as pltpu


_TM = 256   # row tile   (multiple of 8;   lane-dense cos stores)
_TN = 256   # col tile   (multiple of 128; lane-dense cos stores)


def _round_up(x, m):
    return (x + m - 1) // m * m


def _fast_mls_kernel(mu_i_ref, mu_jT_ref, sig_i_ref, sig_j_ref,
                     lab_i_ref, lab_j_ref, cos_ref, rowsum_ref,
                     *, n_valid, tm, tn):
    i = pl.program_id(0)
    j = pl.program_id(1)

    # Per-row partial-sum accumulator: the (TM,1) output block stays resident
    # across the whole j (reduction) axis for this i; init once, add per j.
    @pl.when(j == 0)
    def _():
        rowsum_ref[...] = jnp.zeros_like(rowsum_ref)

    # cos tile = mu_n[iTM:(i+1)TM] @ mu_n.T[:, jTN:(j+1)TN]
    # RHS is pre-transposed in the wrapper -> clean MXU push, no XLU transpose.
    cos = jnp.dot(mu_i_ref[...], mu_jT_ref[...],
                  preferred_element_type=jnp.float32)            # [TM, TN] f32
    cos_ref[...] = cos

    # MLS term.
    fuse = 1e-10 + sig_i_ref[...] + sig_j_ref[...]               # [TM, TN]
    diff = 2.0 * (1.0 - cos) / fuse + jnp.log(fuse)

    # Positive-pair mask: same label, off-diagonal, inside the un-padded N x N.
    row_g = i * tm + lax.broadcasted_iota(jnp.int32, (tm, tn), 0)
    col_g = j * tn + lax.broadcasted_iota(jnp.int32, (tm, tn), 1)
    pos = lab_i_ref[...] == lab_j_ref[...]
    pos = jnp.logical_and(pos, row_g != col_g)
    pos = jnp.logical_and(pos, row_g < n_valid)
    pos = jnp.logical_and(pos, col_g < n_valid)

    masked = jnp.where(pos, diff, 0.0)
    rowsum_ref[...] += jnp.sum(masked, axis=1, keepdims=True)    # [TM, 1]


def fast_mls_loss(mu_X, log_sigma_sq, label):
    """Pallas equivalent of Fast_MLS_Loss.forward.

    Returns (pos_loss, end_points) with the full cosine matrix, sigma, and the
    positive-pair mask in end_points.
    """
    N, D = mu_X.shape
    mu_X = mu_X.astype(jnp.float32)
    lsig = log_sigma_sq.reshape(N).astype(jnp.float32)
    lab = label.reshape(N).astype(jnp.int32)

    # ---- O(N*D) / O(N) prep hoisted out of the N^2 kernel ------------------
    # F.normalize(mu_X): x / max(||x||_2, 1e-12) per row.
    norm = jnp.sqrt(jnp.sum(mu_X * mu_X, axis=1, keepdims=True))
    mu_n = mu_X / jnp.maximum(norm, 1e-12)
    sigma = jnp.exp(lsig)                                        # [N]

    tm, tn = _TM, _TN
    n_pad = _round_up(max(N, 1), tm)                             # tm == tn
    d_pad = _round_up(max(D, 1), 128)

    mu_p = jnp.zeros((n_pad, d_pad), jnp.float32).at[:N, :D].set(mu_n)
    mu_pT = mu_p.T                                               # [D_pad, N_pad]
    sig_col = jnp.zeros((n_pad, 1), jnp.float32).at[:N, 0].set(sigma)
    sig_row = sig_col.reshape(1, n_pad)
    lab_col = jnp.full((n_pad, 1), -1, jnp.int32).at[:N, 0].set(lab)
    lab_row = lab_col.reshape(1, n_pad)

    grid = (n_pad // tm, n_pad // tn)
    kernel = functools.partial(_fast_mls_kernel, n_valid=N, tm=tm, tn=tn)

    cos_pad, row_sums = pl.pallas_call(
        kernel,
        out_shape=(
            jax.ShapeDtypeStruct((n_pad, n_pad), jnp.float32),   # cosine matrix
            jax.ShapeDtypeStruct((n_pad, 1), jnp.float32),       # per-row sums
        ),
        grid_spec=pltpu.PrefetchScalarGridSpec(
            num_scalar_prefetch=0,
            grid=grid,
            in_specs=[
                pl.BlockSpec((tm, d_pad), lambda i, j: (i, 0)),  # mu_n row tile
                pl.BlockSpec((d_pad, tn), lambda i, j: (0, j)),  # mu_n.T col tile
                pl.BlockSpec((tm, 1), lambda i, j: (i, 0)),      # sigma (col)
                pl.BlockSpec((1, tn), lambda i, j: (0, j)),      # sigma (row)
                pl.BlockSpec((tm, 1), lambda i, j: (i, 0)),      # labels (col)
                pl.BlockSpec((1, tn), lambda i, j: (0, j)),      # labels (row)
            ],
            out_specs=(
                pl.BlockSpec((tm, tn), lambda i, j: (i, j)),     # cos tile
                pl.BlockSpec((tm, 1), lambda i, j: (i, 0)),      # rowsum (acc over j)
            ),
        ),
        compiler_params=pltpu.CompilerParams(
            dimension_semantics=("parallel", "arbitrary"),
            vmem_limit_bytes=32 * 1024 * 1024,
        ),
    )(mu_p, mu_pT, sig_col, sig_row, lab_col, lab_row)

    cos = cos_pad[:N, :N]

    # Positive-pair count & mask: cheap XLA work outside the Pallas hot loop.
    label_eq = lab[:, None] == lab[None, :]
    cnt = jnp.sum(label_eq.astype(jnp.int32)) - N
    # Guard against an empty positive set (PyTorch would produce NaN here).
    cnt = jnp.maximum(cnt, 1)
    pos_loss = jnp.sum(row_sums) / cnt.astype(jnp.float32)

    pos_mask = jnp.logical_and(label_eq, ~jnp.eye(N, dtype=bool))
    end_points = {
        "sigma": jnp.exp(log_sigma_sq.astype(jnp.float32)),
        "cos": cos,
        "pos_mask": pos_mask,
    }
    # TODO(synk): PyTorch returns cosine[pos_mask] (data-dependent shape); JAX
    # needs static shapes, so we return the full cosine matrix plus pos_mask.
    return pos_loss, end_points


if __name__ == "__main__":
    key = jax.random.PRNGKey(0)
    N, D = 8, 32
    k1, k2 = jax.random.split(key)
    mu_X = jax.random.normal(k1, (N, D), dtype=jnp.float32)
    log_sigma_sq = jax.random.normal(k2, (N, 1), dtype=jnp.float32) * 0.1 - 1.0
    label = jnp.array([0, 0, 1, 1, 2, 2, 3, 3], dtype=jnp.int32)

    loss, end_points = fast_mls_loss(mu_X, log_sigma_sq, label)
    jax.block_until_ready((loss, end_points))

    # Plain-JAX reference check of the forward semantics.
    mu_n = mu_X / jnp.maximum(
        jnp.linalg.norm(mu_X, axis=1, keepdims=True), 1e-12)
    cos_ref = mu_n @ mu_n.T
    sig_ref = jnp.exp(log_sigma_sq)
    fuse_ref = sig_ref + sig_ref.T
    diff_ref = 2.0 * (1.0 - cos_ref) / (1e-10 + fuse_ref) + jnp.log(1e-10 + fuse_ref)
    lm = label[:, None] == label[None, :]
    nd = ~jnp.eye(N, dtype=bool)
    pm = lm & nd
    loss_ref = jnp.sum(jnp.where(pm, diff_ref, 0.0)) / jnp.sum(pm)

    assert jnp.allclose(loss, loss_ref, rtol=1e-5, atol=1e-5), (loss, loss_ref)
    assert jnp.allclose(end_points["cos"], cos_ref, rtol=1e-5, atol=1e-5)
    assert jnp.allclose(end_points["sigma"], sig_ref, rtol=1e-5, atol=1e-5)
    assert jnp.array_equal(end_points["pos_mask"], pm)
    print("KERNEL_OK")
</pallas_src>

<mosaic_0001>
module attributes {stable_mosaic.version = 11 : i64} {
  func.func @_fast_mls_kernel(%arg0: i32, %arg1: i32, %arg2: memref<256x128xf32, #tpu.memory_space<vmem>>, %arg3: memref<128x256xf32, #tpu.memory_space<vmem>>, %arg4: memref<256x1xf32, #tpu.memory_space<vmem>>, %arg5: memref<1x256xf32, #tpu.memory_space<vmem>>, %arg6: memref<256x1xi32, #tpu.memory_space<vmem>>, %arg7: memref<1x256xi32, #tpu.memory_space<vmem>>, %arg8: memref<256x256xf32, #tpu.memory_space<vmem>>, %arg9: memref<256x1xf32, #tpu.memory_space<vmem>>) attributes {dimension_semantics = [#tpu.dimension_semantics<parallel>, #tpu.dimension_semantics<arbitrary>], iteration_bounds = array<i64: 1, 1>, scalar_prefetch = 0 : i64, scratch_operands = 0 : i64, tpu.core_type = #tpu.core_type<tc>, window_params = [{transform_indices = @transform_0, window_bounds = array<i64: 256, 128>}, {transform_indices = @transform_1, window_bounds = array<i64: 128, 256>}, {transform_indices = @transform_2, window_bounds = array<i64: 256, 1>}, {transform_indices = @transform_3, window_bounds = array<i64: 1, 256>}, {transform_indices = @transform_4, window_bounds = array<i64: 256, 1>}, {transform_indices = @transform_5, window_bounds = array<i64: 1, 256>}, {transform_indices = @transform_6, window_bounds = array<i64: 256, 256>}, {transform_indices = @transform_7, window_bounds = array<i64: 256, 1>}]} {
    %c0_i32 = arith.constant 0 : i32
    %0 = arith.cmpi eq, %arg1, %c0_i32 : i32
    %1 = arith.extui %0 : i1 to i32
    %c0_i32_0 = arith.constant 0 : i32
    %2 = arith.cmpi ne, %1, %c0_i32_0 : i32
    scf.if %2 {
      %cst_25 = arith.constant 0.000000e+00 : f32
      %49 = vector.broadcast %cst_25 : f32 to vector<256x1xf32>
      %c0_26 = arith.constant 0 : index
      %c0_27 = arith.constant 0 : index
      %50 = vector.load %arg9[%c0_26, %c0_27] : memref<256x1xf32, #tpu.memory_space<vmem>>, vector<256x1xf32>
      tpu.vector_store %arg9[%c0_26, %c0_27], %49 {strides = array<i32>} : memref<256x1xf32, #tpu.memory_space<vmem>>, vector<256x1xf32>,
    } else {
    }
    %c0 = arith.constant 0 : index
    %c0_1 = arith.constant 0 : index
    %3 = vector.load %arg2[%c0, %c0_1] : memref<256x128xf32, #tpu.memory_space<vmem>>, vector<256x128xf32>
    %c0_2 = arith.constant 0 : index
    %c0_3 = arith.constant 0 : index
    %4 = vector.load %arg3[%c0_2, %c0_3] : memref<128x256xf32, #tpu.memory_space<vmem>>, vector<128x256xf32>
    %cst = arith.constant dense<0.000000e+00> : vector<256x256xf32>
    %5 = tpu.matmul %3, %4, %cst {dimension_numbers = #tpu.dot_dimension_numbers<[1], [0], [0], [1], [0, 0, 1, 1], [], []>} : vector<256x128xf32>, vector<128x256xf32>, vector<256x256xf32> -> vector<256x256xf32>
    %c0_4 = arith.constant 0 : index
    %c0_5 = arith.constant 0 : index
    %6 = vector.load %arg8[%c0_4, %c0_5] : memref<256x256xf32, #tpu.memory_space<vmem>>, vector<256x256xf32>
    tpu.vector_store %arg8[%c0_4, %c0_5], %5 {strides = array<i32>} : memref<256x256xf32, #tpu.memory_space<vmem>>, vector<256x256xf32>,
    %c0_6 = arith.constant 0 : index
    %c0_7 = arith.constant 0 : index
    %7 = vector.load %arg4[%c0_6, %c0_7] : memref<256x1xf32, #tpu.memory_space<vmem>>, vector<256x1xf32>
    %cst_8 = arith.constant 1.000000e-10 : f32
    %8 = vector.broadcast %cst_8 : f32 to vector<256x1xf32>
    %9 = arith.addf %8, %7 : vector<256x1xf32>
    %c0_9 = arith.constant 0 : index
    %c0_10 = arith.constant 0 : index
    %10 = vector.load %arg5[%c0_9, %c0_10] : memref<1x256xf32, #tpu.memory_space<vmem>>, vector<1x256xf32>
    %11 = vector.broadcast %9 : vector<256x1xf32> to vector<256x256xf32>
    %12 = vector.broadcast %10 : vector<1x256xf32> to vector<256x256xf32>
    %13 = arith.addf %11, %12 : vector<256x256xf32>
    %cst_11 = arith.constant 1.000000e+00 : f32
    %14 = vector.broadcast %cst_11 : f32 to vector<256x256xf32>
    %15 = arith.subf %14, %5 : vector<256x256xf32>
    %cst_12 = arith.constant 2.000000e+00 : f32
    %16 = vector.broadcast %cst_12 : f32 to vector<256x256xf32>
    %17 = arith.mulf %16, %15 : vector<256x256xf32>
    %18 = arith.divf %17, %13 : vector<256x256xf32>
    %19 = math.log %13 : vector<256x256xf32>
    %20 = arith.addf %18, %19 : vector<256x256xf32>
    %c256_i32 = arith.constant 256 : i32
    %21 = arith.muli %arg0, %c256_i32 : i32
    %22 = tpu.iota {dimensions = array<i32: 0>} : vector<256x256xi32>
    %23 = vector.broadcast %21 : i32 to vector<256x256xi32>
    %24 = arith.addi %23, %22 : vector<256x256xi32>
    %c256_i32_13 = arith.constant 256 : i32
    %25 = arith.muli %arg1, %c256_i32_13 : i32
    %26 = tpu.iota {dimensions = array<i32: 1>} : vector<256x256xi32>
    %27 = vector.broadcast %25 : i32 to vector<256x256xi32>
    %28 = arith.addi %27, %26 : vector<256x256xi32>
    %c0_14 = arith.constant 0 : index
    %c0_15 = arith.constant 0 : index
    %29 = vector.load %arg6[%c0_14, %c0_15] : memref<256x1xi32, #tpu.memory_space<vmem>>, vector<256x1xi32>
    %c0_16 = arith.constant 0 : index
    %c0_17 = arith.constant 0 : index
    %30 = vector.load %arg7[%c0_16, %c0_17] : memref<1x256xi32, #tpu.memory_space<vmem>>, vector<1x256xi32>
    %31 = vector.broadcast %29 : vector<256x1xi32> to vector<256x256xi32>
    %32 = vector.broadcast %30 : vector<1x256xi32> to vector<256x256xi32>
    %33 = arith.cmpi eq, %31, %32 : vector<256x256xi32>
    %34 = arith.cmpi ne, %24, %28 : vector<256x256xi32>
    %35 = arith.andi %33, %34 : vector<256x256xi1>
    %c8_i32 = arith.constant 8 : i32
    %36 = vector.broadcast %c8_i32 : i32 to vector<256x256xi32>
    %37 = arith.cmpi slt, %24, %36 : vector<256x256xi32>
    %38 = arith.andi %35, %37 : vector<256x256xi1>
    %c8_i32_18 = arith.constant 8 : i32
    %39 = vector.broadcast %c8_i32_18 : i32 to vector<256x256xi32>
    %40 = arith.cmpi slt, %28, %39 : vector<256x256xi32>
    %41 = arith.andi %38, %40 : vector<256x256xi1>
    %cst_19 = arith.constant 0.000000e+00 : f32
    %42 = vector.broadcast %cst_19 : f32 to vector<256x256xf32>
    %43 = arith.select %41, %20, %42 : vector<256x256xi1>, vector<256x256xf32>
    %c0_20 = arith.constant 0 : index
    %c0_21 = arith.constant 0 : index
    %44 = vector.load %arg9[%c0_20, %c0_21] : memref<256x1xf32, #tpu.memory_space<vmem>>, vector<256x1xf32>
    %cst_22 = arith.constant dense<0.000000e+00> : vector<256xf32>
    %45 = vector.multi_reduction <add>, %43, %cst_22 [1] : vector<256x256xf32> to vector<256xf32>
    %46 = vector.shape_cast %45 : vector<256xf32> to vector<256x1xf32>
    %47 = arith.addf %44, %46 : vector<256x1xf32>
    %c0_23 = arith.constant 0 : index
    %c0_24 = arith.constant 0 : index
    %48 = vector.load %arg9[%c0_23, %c0_24] : memref<256x1xf32, #tpu.memory_space<vmem>>, vector<256x1xf32>
    tpu.vector_store %arg9[%c0_23, %c0_24], %47 {strides = array<i32>} : memref<256x1xf32, #tpu.memory_space<vmem>>, vector<256x1xf32>,
    return
  }
  func.func @transform_0(%arg0: i32, %arg1: i32) -> (i32, i32) {
    %c0_i32 = arith.constant 0 : i32
    %c0_i32_0 = arith.constant 0 : i32
    return %arg0, %c0_i32 : i32, i32
  }
  func.func @transform_1(%arg0: i32, %arg1: i32) -> (i32, i32) {
    %c0_i32 = arith.constant 0 : i32
    %c0_i32_0 = arith.constant 0 : i32
    return %c0_i32, %arg1 : i32, i32
  }
  func.func @transform_2(%arg0: i32, %arg1: i32) -> (i32, i32) {
    %c0_i32 = arith.constant 0 : i32
    %c0_i32_0 = arith.constant 0 : i32
    return %arg0, %c0_i32 : i32, i32
  }
  func.func @transform_3(%arg0: i32, %arg1: i32) -> (i32, i32) {
    %c0_i32 = arith.constant 0 : i32
    %c0_i32_0 = arith.constant 0 : i32
    return %c0_i32, %arg1 : i32, i32
  }
  func.func @transform_4(%arg0: i32, %arg1: i32) -> (i32, i32) {
    %c0_i32 = arith.constant 0 : i32
    %c0_i32_0 = arith.constant 0 : i32
    return %arg0, %c0_i32 : i32, i32
  }
  func.func @transform_5(%arg0: i32, %arg1: i32) -> (i32, i32) {
    %c0_i32 = arith.constant 0 : i32
    %c0_i32_0 = arith.constant 0 : i32
    return %c0_i32, %arg1 : i32, i32
  }
  func.func @transform_6(%arg0: i32, %arg1: i32) -> (i32, i32) {
    %c0_i32 = arith.constant 0 : i32
    return %arg0, %arg1 : i32, i32
  }
  func.func @transform_7(%arg0: i32, %arg1: i32) -> (i32, i32) {
    %c0_i32 = arith.constant 0 : i32
    %c0_i32_0 = arith.constant 0 : i32
    return %arg0, %c0_i32 : i32, i32
  }
}

</mosaic_0001>

<bundles_post_ra>
// kernel: tpu_custom_call.1
= control target key start
LH: loop header
LB: loop body
LE: loop exit
PB: predicated region body
PF: predicated region fallthrough
CT: control target
= control target key end

     0   :  { %v2120_v7 = vmov 0.0   ;;  %v2121_v8 = vmov 0   ;;  %s2834_s0 = inlined_call_operand.vmem [shape: f32[256,128], index: 0, kind: input, shape index: {}]   ;;  %s2835_s1 = inlined_call_operand.vmem [shape: f32[128,256], index: 1, kind: input, shape index: {}]   ;;  %s2836_s2 = inlined_call_operand.vmem [shape: f32[256,1], index: 2, kind: input, shape index: {}]   ;;  %s2837_s3 = inlined_call_operand.vmem [shape: f32[1,256], index: 3, kind: input, shape index: {}]   ;;  %s2838_s4 = inlined_call_operand.vmem [shape: s32[256,1], index: 4, kind: input, shape index: {}]   ;;  %s2839_s5 = inlined_call_operand.vmem [shape: s32[1,256], index: 5, kind: input, shape index: {}]   ;;  %s2840_s6 = inlined_call_operand.hbm [shape: f32[256,256], index: 6, kind: output, shape index: {0}]   ;;  %s2841_s7 = inlined_call_operand.vmem [shape: f32[256,1], index: 7, kind: output, shape index: {1}]  }
   0x1   :  { %v96_v0 = vld [vmem:[%s2835_s1 + $0x8] sm:$0xff]  ;;  %v98_v1 = vld [vmem:[%s2835_s1 + $0x18] sm:$0xff]  ;;  %v95_v2 = vld [vmem:[%s2835_s1] sm:$0xff]  ;;  %191 = vmatprep.mubr.f32.mxu0 %v2120_v7  ;;  %2091 = vset.pattern.permute.xlu0 %v2121_v8 }
   0x2   :  { %v2038_v3 = vpack.c.bf16 %v98_v1, %v96_v0  ;;  %v97_v4 = vld [vmem:[%s2835_s1 + $0x10] sm:$0xff]  ;;  %v100_v5 = vld [vmem:[%s2835_s1 + $0x28] sm:$0xff]  ;;  %v102_v6 = vld [vmem:[%s2835_s1 + $0x38] sm:$0xff]  ;;  %287 = vmatprep.mubr.f32.mxu1 %v2120_v7  ;;  %1861 = vadd.xlane.f32.xlu1 %v2120_v7 }
   0x3   :  { %v2040_v9 = vpack.c.bf16 %v97_v4, %v95_v2  ;;  %v2042_v10 = vpack.c.bf16 %v102_v6, %v100_v5  ;;  %v99_v11 = vld [vmem:[%s2835_s1 + $0x20] sm:$0xff]  ;;  %v101_v12 = vld [vmem:[%s2835_s1 + $0x30] sm:$0xff]  ;;  %v104_v13 = vld [vmem:[%s2835_s1 + $0x48] sm:$0xff] }
   0x4   :  { %2039 = vmatprep.subr.bf16.mxu0 %v2038_v3  ;;  %v106_v14 = vld [vmem:[%s2835_s1 + $0x58] sm:$0xff]  ;;  %2070 = vmatprep.subr.bf16.mxu1 %v2038_v3  ;;  %v2044_v15 = vpack.c.bf16 %v101_v12, %v99_v11  ;;  %v103_v17 = vld [vmem:[%s2835_s1 + $0x40] sm:$0xff]  ;;  %v105_v18 = vld [vmem:[%s2835_s1 + $0x50] sm:$0xff] }
   0x5   :  { %2041 = vmatpush1.bf16.msra.mxu0 %v2040_v9  ;;  %2078 = vmatpush1.bf16.msra.mxu1 %v2040_v9  ;;  %v2046_v16 = vpack.c.bf16 %v106_v14, %v104_v13  ;;  %v108_v19 = vld [vmem:[%s2835_s1 + $0x68] sm:$0xff]  ;;  %v110_v20 = vld [vmem:[%s2835_s1 + $0x78] sm:$0xff]  ;;  %v2048_v21 = vpack.c.bf16 %v105_v18, %v103_v17  ;;  %v107_v23 = vld [vmem:[%s2835_s1 + $0x60] sm:$0xff] }
   0x6   :  { %2043 = vmatprep.subr.bf16.mxu0 %v2042_v10  ;;  %2071 = vmatprep.subr.bf16.mxu1 %v2042_v10  ;;  %v2050_v22 = vpack.c.bf16 %v110_v20, %v108_v19  ;;  %v109_v24 = vld [vmem:[%s2835_s1 + $0x70] sm:$0xff]  ;;  %v112_v25 = vld [vmem:[%s2835_s1 + $0x88] sm:$0xff]  ;;  %v114_v26 = vld [vmem:[%s2835_s1 + $0x98] sm:$0xff] }
   0x7   :  { %1867 = vadd.xlane.f32.xlu1 %v2120_v7  ;;  %v448_v27 = vld [vmem:[%s2836_s2] sm:$0xff]  ;;  %v2052_v28 = vpack.c.bf16 %v109_v24, %v107_v23  ;;  %v2054_v30 = vpack.c.bf16 %v114_v26, %v112_v25  ;;  %v113_v32 = vld [vmem:[%s2835_s1 + $0x90] sm:$0xff]  ;;  %v116_v33 = vld [vmem:[%s2835_s1 + $0xa8] sm:$0xff] }
   0x8   :  { %v480_v29 = vadd.f32 1e-10, %v448_v27  ;;  %v111_v31 = vld [vmem:[%s2835_s1 + $0x80] sm:$0xff]  ;;  %v118_v34 = vld [vmem:[%s2835_s1 + $0xb8] sm:$0xff]  ;;  %v117_v39 = vld [vmem:[%s2835_s1 + $0xb0] sm:$0xff] }
   0x9   :  { %2045 = vmatpush1.bf16.msra.mxu0 %v2044_v15  ;;  %2079 = vmatpush1.bf16.msra.mxu1 %v2044_v15  ;;  %v1270_v35 = vld [vmem:[%s2838_s4] sm:$0xff]  ;;  %v2056_v36 = vpack.c.bf16 %v113_v32, %v111_v31  ;;  %v2058_v37 = vpack.c.bf16 %v118_v34, %v116_v33  ;;  %v120_v40 = vld [vmem:[%s2835_s1 + $0xc8] sm:$0xff]  ;;  %v122_v41 = vld [vmem:[%s2835_s1 + $0xd8] sm:$0xff] }
   0xa   :  { %2047 = vmatprep.subr.bf16.mxu0 %v2046_v16  ;;  %2072 = vmatprep.subr.bf16.mxu1 %v2046_v16  ;;  %v115_v38 = vld [vmem:[%s2835_s1 + $0xa0] sm:$0xff]  ;;  %v2062_v43 = vpack.c.bf16 %v122_v41, %v120_v40  ;;  %v121_v45 = vld [vmem:[%s2835_s1 + $0xd0] sm:$0xff]  ;;  %v124_v46 = vld [vmem:[%s2835_s1 + $0xe8] sm:$0xff] }
   0xb   :  { %1870 = vadd.xlane.f32.xlu1 %v2120_v7  ;;  %515 = vperm.xlu0 %2091, %v480_v29   ;;  %v2060_v42 = vpack.c.bf16 %v117_v39, %v115_v38  ;;  %v119_v44 = vld [vmem:[%s2835_s1 + $0xc0] sm:$0xff]  ;;  %v126_v47 = vld [vmem:[%s2835_s1 + $0xf8] sm:$0xff] }
   0xd   :  { %2049 = vmatpush1.bf16.msra.mxu0 %v2048_v21  ;;  %2080 = vmatpush1.bf16.msra.mxu1 %v2048_v21 }
   0xe   :  { %2051 = vmatprep.subr.bf16.mxu0 %v2050_v22  ;;  %2073 = vmatprep.subr.bf16.mxu1 %v2050_v22 }
   0xf   :  { %1873 = vadd.xlane.f32.xlu1 %v2120_v7  ;;  %1304 = vperm.xlu0 %2091, %v1270_v35  }
  0x11   :  { %2053 = vmatpush1.bf16.msra.mxu0 %v2052_v28  ;;  %2081 = vmatpush1.bf16.msra.mxu1 %v2052_v28 }
  0x12   :  { %2055 = vmatprep.subr.bf16.mxu0 %v2054_v30  ;;  %2074 = vmatprep.subr.bf16.mxu1 %v2054_v30 }
  0x13   :  { %1876 = vadd.xlane.f32.xlu1 %v2120_v7 }
  0x15   :  { %2057 = vmatpush1.bf16.msra.mxu0 %v2056_v36  ;;  %2082 = vmatpush1.bf16.msra.mxu1 %v2056_v36 }
  0x16   :  { %2059 = vmatprep.subr.bf16.mxu0 %v2058_v37  ;;  %2075 = vmatprep.subr.bf16.mxu1 %v2058_v37 }
  0x17   :  { %1879 = vadd.xlane.f32.xlu1 %v2120_v7 }
  0x18   :  { %13 = vsyncpa [#allocation3], 0  ;;  %v2064_v48 = vpack.c.bf16 %v121_v45, %v119_v44  ;;  %v2066_v49 = vpack.c.bf16 %v126_v47, %v124_v46  ;;  %v123_v50 = vld [vmem:[%s2835_s1 + $0xe0] sm:$0xff]  ;;  %v125_v51 = vld [vmem:[%s2835_s1 + $0xf0] sm:$0xff]  ;;  %vm30_vm0 = vcmask 7168   ;;  %s2122_s28 = smov [#allocation2]  }
  0x19   :  { %2061 = vmatpush1.bf16.msra.mxu0 %v2060_v42  ;;  %2083 = vmatpush1.bf16.msra.mxu1 %v2060_v42  ;;  %v2068_v52 = vpack.c.bf16 %v125_v51, %v123_v50  ;;  %v63_v53 = vld [vmem:[%s2834_s0] sm:$0xff]  ;;  %v64_v55 = vld [vmem:[%s2834_s0 + $0x8] sm:$0xff]  ;;  %v65_v57 = vld [vmem:[%s2834_s0 + $0x10] sm:$0xff]  ;;  %32 = vst.msk [vmem:[%s2841_s7 + $0x8] sm:$0xff] %vm30_vm0, %v2120_v7  ;;  %s2023_s29 = sshll.u32 %s2122_s28, 4  ;;  %s2024_s29 = int_to_ptr.vmem [resolvable:$true] %s2023_s29 }
  0x1a   :  { %2063 = vmatprep.subr.bf16.mxu0 %v2062_v43  ;;  %2076 = vmatprep.subr.bf16.mxu1 %v2062_v43  ;;  %v79_v54 = vld [vmem:[%s2834_s0 + $0x80] sm:$0xff]  ;;  %v80_v56 = vld [vmem:[%s2834_s0 + $0x88] sm:$0xff]  ;;  %v81_v58 = vld [vmem:[%s2834_s0 + $0x90] sm:$0xff]  ;;  %31 = vst.msk [vmem:[%s2841_s7] sm:$0xff] %vm30_vm0, %v2120_v7  ;;  %s2096_s30 = scalar_lea.vmem %s2024_s29, 8192  ;;  %p2101_p1 = scmp.lt.s32.totalorder %s2024_s29, %s2024_s29 }
  0x1b   :  { %1882 = vadd.xlane.f32.xlu1 %v2120_v7  ;;  %v66_v59 = vld [vmem:[%s2834_s0 + $0x18] sm:$0xff]  ;;  %v67_v61 = vld [vmem:[%s2834_s0 + $0x20] sm:$0xff]  ;;  %v68_v63 = vld [vmem:[%s2834_s0 + $0x28] sm:$0xff]  ;;  %33 = vst.msk [vmem:[%s2841_s7 + $0x10] sm:$0xff] %vm30_vm0, %v2120_v7  ;;  %p2097_p0 = scmp.ne.s32.totalorder %s2024_s29, %s2096_s30  ;;  %p2102_p2 = scmp.lt.s32.totalorder %s2096_s30, %s2096_s30 }
  0x1c   :  { %v82_v60 = vld [vmem:[%s2834_s0 + $0x98] sm:$0xff]  ;;  %v83_v62 = vld [vmem:[%s2834_s0 + $0xa0] sm:$0xff]  ;;  %v84_v0 = vld [vmem:[%s2834_s0 + $0xa8] sm:$0xff]  ;;  %34 = vst.msk [vmem:[%s2841_s7 + $0x18] sm:$0xff] %vm30_vm0, %v2120_v7 }
  0x1d   :  { %2065 = vmatpush1.bf16.msra.mxu0 %v2064_v48  ;;  %2084 = vmatpush1.bf16.msra.mxu1 %v2064_v48  ;;  %v69_v1 = vld [vmem:[%s2834_s0 + $0x30] sm:$0xff]  ;;  %v70_v3 = vld [vmem:[%s2834_s0 + $0x38] sm:$0xff]  ;;  %v71_v5 = vld [vmem:[%s2834_s0 + $0x40] sm:$0xff]  ;;  %35 = vst.msk [vmem:[%s2841_s7 + $0x20] sm:$0xff] %vm30_vm0, %v2120_v7  ;;  %p2103_p3 = por %p2102_p2, %p2101_p1 }
  0x1e   :  { %2067 = vmatprep.subr.bf16.mxu0 %v2066_v49  ;;  %2077 = vmatprep.subr.bf16.mxu1 %v2066_v49  ;;  %v85_v2 = vld [vmem:[%s2834_s0 + $0xb0] sm:$0xff]  ;;  %v86_v4 = vld [vmem:[%s2834_s0 + $0xb8] sm:$0xff]  ;;  %v87_v6 = vld [vmem:[%s2834_s0 + $0xc0] sm:$0xff]  ;;  %36 = vst.msk [vmem:[%s2841_s7 + $0x28] sm:$0xff] %vm30_vm0, %v2120_v7 }
  0x1f   :  { %1885 = vadd.xlane.f32.xlu1 %v2120_v7  ;;  %v72_v8 = vld [vmem:[%s2834_s0 + $0x48] sm:$0xff]  ;;  %v73_v10 = vld [vmem:[%s2834_s0 + $0x50] sm:$0xff]  ;;  %v74_v12 = vld [vmem:[%s2834_s0 + $0x58] sm:$0xff]  ;;  %37 = vst.msk [vmem:[%s2841_s7 + $0x30] sm:$0xff] %vm30_vm0, %v2120_v7  ;;  %p2104_p4 = pnand %p2103_p3, %p2097_p0 }
  0x20   :  { %v88_v9 = vld [vmem:[%s2834_s0 + $0xc8] sm:$0xff]  ;;  %v89_v11 = vld [vmem:[%s2834_s0 + $0xd0] sm:$0xff]  ;;  %v90_v13 = vld [vmem:[%s2834_s0 + $0xd8] sm:$0xff]  ;;  %38 = vst.msk [vmem:[%s2841_s7 + $0x38] sm:$0xff] %vm30_vm0, %v2120_v7 }
  0x21   :  { %2069 = vmatpush1.bf16.msra.mxu0 %v2068_v52  ;;  %2085 = vmatpush1.bf16.msra.mxu1 %v2068_v52  ;;  %v75_v14 = vld [vmem:[%s2834_s0 + $0x60] sm:$0xff]  ;;  %v76_v16 = vld [vmem:[%s2834_s0 + $0x68] sm:$0xff]  ;;  %v77_v18 = vld [vmem:[%s2834_s0 + $0x70] sm:$0xff]  ;;  %39 = vst.msk [vmem:[%s2841_s7 + $0x40] sm:$0xff] %vm30_vm0, %v2120_v7 }
  0x22   :  { %v91_v15 = vld [vmem:[%s2834_s0 + $0xe0] sm:$0xff]  ;;  %v92_v17 = vld [vmem:[%s2834_s0 + $0xe8] sm:$0xff]  ;;  %v93_v19 = vld [vmem:[%s2834_s0 + $0xf0] sm:$0xff]  ;;  %40 = vst.msk [vmem:[%s2841_s7 + $0x48] sm:$0xff] %vm30_vm0, %v2120_v7 }
  0x23   :  { %1888 = vadd.xlane.f32.xlu1 %v2120_v7  ;;  %v78_v20 = vld [vmem:[%s2834_s0 + $0x78] sm:$0xff]  ;;  %41 = vst.msk [vmem:[%s2841_s7 + $0x50] sm:$0xff] %vm30_vm0, %v2120_v7  ;;  %42 = vst.msk [vmem:[%s2841_s7 + $0x58] sm:$0xff] %vm30_vm0, %v2120_v7  ;;  %v1826_v22 = vld [vmem:[%s2841_s7 + $0x8] sm:$0xff] }
  0x24   :  { %192 = vmatmul.mubr.f32.vlgmr.msra.gmra.mrb[0].mxu0 %v63_v53  ;;  %288 = vmatmul.mubr.f32.vlgmr.msra.gmra.mrb[0].mxu1 %v79_v54  ;;  %v94_v21 = vld [vmem:[%s2834_s0 + $0xf8] sm:$0xff]  ;;  %43 = vst.msk [vmem:[%s2841_s7 + $0x60] sm:$0xff] %vm30_vm0, %v2120_v7  ;;  %44 = vst.msk [vmem:[%s2841_s7 + $0x68] sm:$0xff] %vm30_vm0, %v2120_v7  ;;  %v1829_v28 = vld [vmem:[%s2841_s7 + $0x20] sm:$0xff] }
  0x25   :  { %197 = vmatprep.mubr.f32.mxu0 %v2120_v7  ;;  %293 = vmatprep.mubr.f32.mxu1 %v2120_v7  ;;  %45 = vst.msk [vmem:[%s2841_s7 + $0x70] sm:$0xff] %vm30_vm0, %v2120_v7  ;;  %46 = vst.msk [vmem:[%s2841_s7 + $0x78] sm:$0xff] %vm30_vm0, %v2120_v7  ;;  %v1828_v25 = vld [vmem:[%s2841_s7 + $0x18] sm:$0xff]  ;;  %v1830_v31 = vld [vmem:[%s2841_s7 + $0x28] sm:$0xff] }
  0x26   :  { %47 = vst.msk [vmem:[%s2841_s7 + $0x80] sm:$0xff] %vm30_vm0, %v2120_v7  ;;  %48 = vst.msk [vmem:[%s2841_s7 + $0x88] sm:$0xff] %vm30_vm0, %v2120_v7  ;;  %v1831_v34 = vld [vmem:[%s2841_s7 + $0x30] sm:$0xff] }
  0x27   :  { %1894 = vadd.xlane.f32.xlu1 %v2120_v7  ;;  %49 = vst.msk [vmem:[%s2841_s7 + $0x90] sm:$0xff] %vm30_vm0, %v2120_v7  ;;  %50 = vst.msk [vmem:[%s2841_s7 + $0x98] sm:$0xff] %vm30_vm0, %v2120_v7  ;;  %v1832_v37 = vld [vmem:[%s2841_s7 + $0x38] sm:$0xff] }
  0x28   :  { %198 = vmatmul.mubr.f32.gmra.mrb[2].mxu0 %v64_v55  ;;  %294 = vmatmul.mubr.f32.gmra.mrb[2].mxu1 %v80_v56  ;;  %51 = vst.msk [vmem:[%s2841_s7 + $0xa0] sm:$0xff] %vm30_vm0, %v2120_v7  ;;  %52 = vst.msk [vmem:[%s2841_s7 + $0xa8] sm:$0xff] %vm30_vm0, %v2120_v7  ;;  %v1833_v40 = vld [vmem:[%s2841_s7 + $0x40] sm:$0xff] }
  0x29   :  { %203 = vmatprep.mubr.f32.mxu0 %v2120_v7  ;;  %299 = vmatprep.mubr.f32.mxu1 %v2120_v7  ;;  %53 = vst.msk [vmem:[%s2841_s7 + $0xb0] sm:$0xff] %vm30_vm0, %v2120_v7  ;;  %54 = vst.msk [vmem:[%s2841_s7 + $0xb8] sm:$0xff] %vm30_vm0, %v2120_v7  ;;  %v1834_v43 = vld [vmem:[%s2841_s7 + $0x48] sm:$0xff] }
  0x2a   :  { %55 = vst.msk [vmem:[%s2841_s7 + $0xc0] sm:$0xff] %vm30_vm0, %v2120_v7  ;;  %56 = vst.msk [vmem:[%s2841_s7 + $0xc8] sm:$0xff] %vm30_vm0, %v2120_v7  ;;  %v1835_v46 = vld [vmem:[%s2841_s7 + $0x50] sm:$0xff] }
  0x2b   :  { %1900 = vadd.xlane.f32.xlu1 %v2120_v7  ;;  %57 = vst.msk [vmem:[%s2841_s7 + $0xd0] sm:$0xff] %vm30_vm0, %v2120_v7  ;;  %58 = vst.msk [vmem:[%s2841_s7 + $0xd8] sm:$0xff] %vm30_vm0, %v2120_v7  ;;  %v1837_v49 = vld [vmem:[%s2841_s7 + $0x60] sm:$0xff] }
  0x2c   :  { %204 = vmatmul.mubr.f32.gmra.mrb[4].mxu0 %v65_v57  ;;  %300 = vmatmul.mubr.f32.gmra.mrb[4].mxu1 %v81_v58  ;;  %59 = vst.msk [vmem:[%s2841_s7 + $0xe0] sm:$0xff] %vm30_vm0, %v2120_v7  ;;  %60 = vst.msk [vmem:[%s2841_s7 + $0xe8] sm:$0xff] %vm30_vm0, %v2120_v7  ;;  %v1839_v53 = vld [vmem:[%s2841_s7 + $0x70] sm:$0xff] }
  0x2d   :  { %209 = vmatprep.mubr.f32.mxu0 %v2120_v7  ;;  %305 = vmatprep.mubr.f32.mxu1 %v2120_v7  ;;  %61 = vst.msk [vmem:[%s2841_s7 + $0xf0] sm:$0xff] %vm30_vm0, %v2120_v7  ;;  %62 = vst.msk [vmem:[%s2841_s7 + $0xf8] sm:$0xff] %vm30_vm0, %v2120_v7  ;;  %v1841_v56 = vld [vmem:[%s2841_s7 + $0x80] sm:$0xff] }
  0x2e   :  { %1864 = vadd.xlane.f32.xlu0 %v2120_v7 }
  0x2f   :  { %1906 = vadd.xlane.f32.xlu1 %v2120_v7 }
  0x30   :  { %210 = vmatmul.mubr.f32.gmra.mrb[6].mxu0 %v66_v59  ;;  %306 = vmatmul.mubr.f32.gmra.mrb[6].mxu1 %v82_v60  ;;  %v1827_v59 = vld [vmem:[%s2841_s7 + $0x10] sm:$0xff] }
  0x31   :  { %215 = vmatprep.mubr.f32.mxu0 %v2120_v7  ;;  %311 = vmatprep.mubr.f32.mxu1 %v2120_v7 }
  0x32   :  { %1891 = vadd.xlane.f32.xlu0 %v2120_v7 }
  0x33   :  { %1912 = vadd.xlane.f32.xlu1 %v2120_v7 }
  0x34   :  { %216 = vmatmul.mubr.f32.gmra.mrb[8].mxu0 %v67_v61  ;;  %312 = vmatmul.mubr.f32.gmra.mrb[8].mxu1 %v83_v62  ;;  %v1843_v61 = vld [vmem:[%s2841_s7 + $0x90] sm:$0xff] }
  0x35   :  { %221 = vmatprep.mubr.f32.mxu0 %v2120_v7  ;;  %317 = vmatprep.mubr.f32.mxu1 %v2120_v7 }
  0x36   :  { %1897 = vadd.xlane.f32.xlu0 %v2120_v7 }
  0x37   :  { %1918 = vadd.xlane.f32.xlu1 %v2120_v7 }
  0x38   :  { %222 = vmatmul.mubr.f32.gmra.mrb[10].mxu0 %v68_v63  ;;  %318 = vmatmul.mubr.f32.gmra.mrb[10].mxu1 %v84_v0 }
  0x39   :  { %227 = vmatprep.mubr.f32.mxu0 %v2120_v7  ;;  %323 = vmatprep.mubr.f32.mxu1 %v2120_v7 }
  0x3a   :  { %1903 = vadd.xlane.f32.xlu0 %v2120_v7 }
  0x3b   :  { %1924 = vadd.xlane.f32.xlu1 %v2120_v7 }
  0x3c   :  { %228 = vmatmul.mubr.f32.gmra.mrb[12].mxu0 %v69_v1  ;;  %324 = vmatmul.mubr.f32.gmra.mrb[12].mxu1 %v85_v2  ;;  %v1836_v1 = vld [vmem:[%s2841_s7 + $0x58] sm:$0xff] }
  0x3d   :  { %233 = vmatprep.mubr.f32.mxu0 %v2120_v7  ;;  %329 = vmatprep.mubr.f32.mxu1 %v2120_v7 }
  0x3e   :  { %1909 = vadd.xlane.f32.xlu0 %v2120_v7 }
  0x3f   :  { %1930 = vadd.xlane.f32.xlu1 %v2120_v7 }
  0x40   :  { %234 = vmatmul.mubr.f32.gmra.mrb[14].mxu0 %v70_v3  ;;  %330 = vmatmul.mubr.f32.gmra.mrb[14].mxu1 %v86_v4  ;;  %v1845_v3 = vld [vmem:[%s2841_s7 + $0xa0] sm:$0xff] }
  0x41   :  { %239 = vmatprep.mubr.f32.mxu0 %v2120_v7  ;;  %335 = vmatprep.mubr.f32.mxu1 %v2120_v7 }
  0x42   :  { %1915 = vadd.xlane.f32.xlu0 %v2120_v7 }
  0x43   :  { %1936 = vadd.xlane.f32.xlu1 %v2120_v7 }
  0x44   :  { %240 = vmatmul.mubr.f32.gmra.mrb[16].mxu0 %v71_v5  ;;  %336 = vmatmul.mubr.f32.gmra.mrb[16].mxu1 %v87_v6 }
  0x45   :  { %245 = vmatprep.mubr.f32.mxu0 %v2120_v7  ;;  %341 = vmatprep.mubr.f32.mxu1 %v2120_v7 }
  0x46   :  { %1921 = vadd.xlane.f32.xlu0 %v2120_v7 }
  0x47   :  { %1942 = vadd.xlane.f32.xlu1 %v2120_v7 }
  0x48   :  { %246 = vmatmul.mubr.f32.gmra.mrb[18].mxu0 %v72_v8  ;;  %342 = vmatmul.mubr.f32.gmra.mrb[18].mxu1 %v88_v9  ;;  %v1838_v8 = vld [vmem:[%s2841_s7 + $0x68] sm:$0xff] }
  0x49   :  { %251 = vmatprep.mubr.f32.mxu0 %v2120_v7  ;;  %347 = vmatprep.mubr.f32.mxu1 %v2120_v7 }
  0x4a   :  { %1927 = vadd.xlane.f32.xlu0 %v2120_v7 }
  0x4c   :  { %252 = vmatmul.mubr.f32.gmra.mrb[20].mxu0 %v73_v10  ;;  %348 = vmatmul.mubr.f32.gmra.mrb[20].mxu1 %v89_v11  ;;  %v1847_v10 = vld [vmem:[%s2841_s7 + $0xb0] sm:$0xff] }
  0x4d   :  { %257 = vmatprep.mubr.f32.mxu0 %v2120_v7  ;;  %353 = vmatprep.mubr.f32.mxu1 %v2120_v7 }
  0x4e   :  { %1933 = vadd.xlane.f32.xlu0 %v2120_v7 }
  0x50   :  { %258 = vmatmul.mubr.f32.gmra.mrb[22].mxu0 %v74_v12  ;;  %354 = vmatmul.mubr.f32.gmra.mrb[22].mxu1 %v90_v13 }
  0x51   :  { %263 = vmatprep.mubr.f32.mxu0 %v2120_v7  ;;  %359 = vmatprep.mubr.f32.mxu1 %v2120_v7 }
  0x52   :  { %1939 = vadd.xlane.f32.xlu0 %v2120_v7 }
  0x54   :  { %264 = vmatmul.mubr.f32.gmra.mrb[24].mxu0 %v75_v14  ;;  %360 = vmatmul.mubr.f32.gmra.mrb[24].mxu1 %v91_v15  ;;  %v1840_v14 = vld [vmem:[%s2841_s7 + $0x78] sm:$0xff] }
  0x55   :  { %269 = vmatprep.mubr.f32.mxu0 %v2120_v7  ;;  %365 = vmatprep.mubr.f32.mxu1 %v2120_v7 }
  0x56   :  { %1945 = vadd.xlane.f32.xlu0 %v2120_v7 }
  0x58   :  { %270 = vmatmul.mubr.f32.gmra.mrb[26].mxu0 %v76_v16  ;;  %366 = vmatmul.mubr.f32.gmra.mrb[26].mxu1 %v92_v17  ;;  %v1849_v16 = vld [vmem:[%s2841_s7 + $0xc0] sm:$0xff] }
  0x59   :  { %275 = vmatprep.mubr.f32.mxu0 %v2120_v7  ;;  %371 = vmatprep.mubr.f32.mxu1 %v2120_v7 }
  0x5a   :  { %1951 = vadd.xlane.f32.xlu0 %v2120_v7 }
  0x5c   :  { %276 = vmatmul.mubr.f32.gmra.mrb[28].mxu0 %v77_v18  ;;  %372 = vmatmul.mubr.f32.gmra.mrb[28].mxu1 %v93_v19 }
  0x5d   :  { %281 = vmatprep.mubr.f32.mxu0 %v2120_v7  ;;  %377 = vmatprep.mubr.f32.mxu1 %v2120_v7 }
  0x60   :  { %282 = vmatmul.mubr.f32.gmra.mrb[30].mxu0 %v78_v20  ;;  %378 = vmatmul.mubr.f32.gmra.mrb[30].mxu1 %v94_v21  ;;  %v1842_v20 = vld [vmem:[%s2841_s7 + $0x88] sm:$0xff] }
  0x8a   :  { %v2651_v51 = vpop.permute.xlu0 %515 }
  0x8e   :  { %v2663_v57 = vpop.permute.xlu0 %1304 }
  0x8f   :  { %v1862_v23 = vpop.xlane.xlu1 %1861 }
  0x90   :  { %v1954_v24 = vadd.f32 %v1862_v23, %v1826_v22  ;;  %v1851_v22 = vld [vmem:[%s2841_s7 + $0xd0] sm:$0xff] }
  0x92   :  { %1987 = vst.msk [vmem:[%s2841_s7 + $0x8] sm:$0xff] %vm30_vm0, %v1954_v24 }
  0x94   :  { %v1868_v26 = vpop.xlane.xlu1 %1867 }
  0x95   :  { %v1956_v27 = vadd.f32 %v1868_v26, %v1828_v25  ;;  %v1844_v26 = vld [vmem:[%s2841_s7 + $0x98] sm:$0xff] }
  0x97   :  { %1989 = vst.msk [vmem:[%s2841_s7 + $0x18] sm:$0xff] %vm30_vm0, %v1956_v27 }
  0x98   :  { %v1871_v29 = vpop.xlane.xlu1 %1870 }
  0x99   :  { %v1957_v30 = vadd.f32 %v1871_v29, %v1829_v28  ;;  %v1853_v28 = vld [vmem:[%s2841_s7 + $0xe0] sm:$0xff] }
  0x9b   :  { %1990 = vst.msk [vmem:[%s2841_s7 + $0x20] sm:$0xff] %vm30_vm0, %v1957_v30 }
  0x9c   :  { %v1874_v32 = vpop.xlane.xlu1 %1873 }
  0x9d   :  { %v1958_v33 = vadd.f32 %v1874_v32, %v1830_v31  ;;  %v1846_v32 = vld [vmem:[%s2841_s7 + $0xa8] sm:$0xff] }
  0x9f   :  { %1991 = vst.msk [vmem:[%s2841_s7 + $0x28] sm:$0xff] %vm30_vm0, %v1958_v33 }
  0xa0   :  { %v1877_v35 = vpop.xlane.xlu1 %1876 }
  0xa1   :  { %v1959_v36 = vadd.f32 %v1877_v35, %v1831_v34 }
  0xa3   :  { %1992 = vst.msk [vmem:[%s2841_s7 + $0x30] sm:$0xff] %vm30_vm0, %v1959_v36  ;;  %v674_v36 = vlaneseq }
  0xa4   :  { %v1880_v38 = vpop.xlane.xlu1 %1879 }
  0xa5   :  { %v1960_v39 = vadd.f32 %v1880_v38, %v1832_v37  ;;  %v1848_v37 = vld [vmem:[%s2841_s7 + $0xb8] sm:$0xff] }
  0xa7   :  { %1993 = vst.msk [vmem:[%s2841_s7 + $0x38] sm:$0xff] %vm30_vm0, %v1960_v39 }
  0xa8   :  { %v1883_v41 = vpop.xlane.xlu1 %1882 }
  0xa9   :  { %v1961_v42 = vadd.f32 %v1883_v41, %v1833_v40  ;;  %v675_v40 = vshrl.u32 %v674_v36, 7  ;;  %v1850_v41 = vld [vmem:[%s2841_s7 + $0xc8] sm:$0xff] }
  0xab   :  { %1994 = vst.msk [vmem:[%s2841_s7 + $0x40] sm:$0xff] %vm30_vm0, %v1961_v42 }
  0xac   :  { %v1886_v44 = vpop.xlane.xlu1 %1885 }
  0xad   :  { %v1962_v45 = vadd.f32 %v1886_v44, %v1834_v43  ;;  %v676_v44 = vsub.s32 0, %v675_v40 }
  0xaf   :  { %1995 = vst.msk [vmem:[%s2841_s7 + $0x48] sm:$0xff] %vm30_vm0, %v1962_v45  ;;  %v1852_v45 = vld [vmem:[%s2841_s7 + $0xd8] sm:$0xff] }
  0xb0   :  { %v1889_v47 = vpop.xlane.xlu1 %1888 }
  0xb1   :  { %v1963_v48 = vadd.f32 %v1889_v47, %v1835_v46  ;;  %v512_v46 = vld [vmem:[%s2837_s3] sm:$0x3] }
  0xb3   :  { %1996 = vst.msk [vmem:[%s2841_s7 + $0x50] sm:$0xff] %vm30_vm0, %v1963_v48 }
  0xb4   :  { %v1895_v50 = vpop.xlane.xlu1 %1894 }
  0xb5   :  { %v1965_v52 = vadd.f32 %v1895_v50, %v1837_v49  ;;  %v677_v49 = vrot.slane %v512_v46, %v676_v44  ;;  %v1854_v50 = vld [vmem:[%s2841_s7 + $0xe8] sm:$0xff] }
  0xb7   :  { %1998 = vst.msk [vmem:[%s2841_s7 + $0x60] sm:$0xff] %vm30_vm0, %v1965_v52 }
  0xb8   :  { %v1901_v54 = vpop.xlane.xlu1 %1900 }
  0xb9   :  { %v1967_v55 = vadd.f32 %v1901_v54, %v1839_v53  ;;  %v684_v54 = vadd.f32 %v677_v49, %v2651_v51 }
  0xbb   :  { %2000 = vst.msk [vmem:[%s2841_s7 + $0x70] sm:$0xff] %vm30_vm0, %v1967_v55  ;;  %v1865_v62 = vpop.xlane.xlu0 %1864  ;;  %2092 = vlog2.f32 %v684_v54  ;;  %v1302_v55 = vld [vmem:[%s2839_s5] sm:$0x3] }
  0xbc   :  { %v1907_v58 = vpop.xlane.xlu1 %1906  ;;  %v1955_v63 = vadd.f32 %v1865_v62, %v1827_v59  ;;  %2094 = vrcp.f32 %v684_v54 }
  0xbd   :  { %v1969_v60 = vadd.f32 %v1907_v58, %v1841_v56  ;;  %v1265_v56 = vand.u32 127, %v674_v36  ;;  %v1402_v58 = vrot.slane %v1302_v55, %v676_v44 }
  0xbe   :  { %1988 = vst.msk [vmem:[%s2841_s7 + $0x10] sm:$0xff] %vm30_vm0, %v1955_v63 }
  0xbf   :  { %2002 = vst.msk [vmem:[%s2841_s7 + $0x80] sm:$0xff] %vm30_vm0, %v1969_v60  ;;  %v1892_v4 = vpop.xlane.xlu0 %1891  ;;  %vm1471_vm1 = vcmp.ne.s32.totalorder %v675_v40, %v1265_v56  ;;  %vm1407_vm2 = vcmp.eq.s32.totalorder %v2663_v57, %v1402_v58  ;;  %vm1695_vm4 = vcmp.lt.s32.totalorder %v1265_v56, 8 }
  0xc0   :  { %v1913_v0 = vpop.xlane.xlu1 %1912  ;;  %v1964_v5 = vadd.f32 %v1892_v4, %v1836_v1  ;;  %vm1535_vm3 = vmand %vm1407_vm2, %vm1471_vm1 }
  0xc1   :  { %v1971_v2 = vadd.f32 %v1913_v0, %v1843_v61  ;;  %vm1697_vm5 = vmand %vm1535_vm3, %vm1695_vm4 }
  0xc2   :  { %1997 = vst.msk [vmem:[%s2841_s7 + $0x58] sm:$0xff] %vm30_vm0, %v1964_v5 }
  0xc3   :  { %2004 = vst.msk [vmem:[%s2841_s7 + $0x90] sm:$0xff] %vm30_vm0, %v1971_v2  ;;  %v1898_v11 = vpop.xlane.xlu0 %1897 }
  0xc4   :  { %v1919_v6 = vpop.xlane.xlu1 %1918  ;;  %v1966_v12 = vadd.f32 %v1898_v11, %v1838_v8 }
  0xc5   :  { %v1973_v9 = vadd.f32 %v1919_v6, %v1845_v3  ;;  %v2093_v59 = vpop.eup %2092 }
  0xc6   :  { %1999 = vst.msk [vmem:[%s2841_s7 + $0x68] sm:$0xff] %vm30_vm0, %v1966_v12  ;;  %v2095_v0 = vpop.eup %2094  ;;  %v1005_v2 = vmul.f32 0.6931472, %v2093_v59 }
  0xc7   :  { %2006 = vst.msk [vmem:[%s2841_s7 + $0xa0] sm:$0xff] %vm30_vm0, %v1973_v9  ;;  %v1904_v17 = vpop.xlane.xlu0 %1903 }
  0xc8   :  { %v1925_v13 = vpop.xlane.xlu1 %1924  ;;  %v1968_v18 = vadd.f32 %v1904_v17, %v1840_v14 }
  0xc9   :  { %v1975_v15 = vadd.f32 %v1925_v13, %v1847_v10 }
  0xca   :  { %2001 = vst.msk [vmem:[%s2841_s7 + $0x78] sm:$0xff] %vm30_vm0, %v1968_v18 }
  0xcb   :  { %2008 = vst.msk [vmem:[%s2841_s7 + $0xb0] sm:$0xff] %vm30_vm0, %v1975_v15  ;;  %v1910_v23 = vpop.xlane.xlu0 %1909 }
  0xcc   :  { %v1931_v19 = vpop.xlane.xlu1 %1930  ;;  %v1970_v24 = vadd.f32 %v1910_v23, %v1842_v20 }
  0xcd   :  { %v1977_v21 = vadd.f32 %v1931_v19, %v1849_v16 }
  0xce   :  { %2003 = vst.msk [vmem:[%s2841_s7 + $0x88] sm:$0xff] %vm30_vm0, %v1970_v24 }
  0xcf   :  { %2010 = vst.msk [vmem:[%s2841_s7 + $0xc0] sm:$0xff] %vm30_vm0, %v1977_v21  ;;  %v1916_v29 = vpop.xlane.xlu0 %1915 }
  0xd0   :  { %v1937_v25 = vpop.xlane.xlu1 %1936  ;;  %v1972_v30 = vadd.f32 %v1916_v29, %v1844_v26 }
  0xd1   :  { %v1979_v27 = vadd.f32 %v1937_v25, %v1851_v22 }
  0xd2   :  { %2005 = vst.msk [vmem:[%s2841_s7 + $0x98] sm:$0xff] %vm30_vm0, %v1972_v30  ;;  %v1856_v30 = vld [vmem:[%s2841_s7 + $0xf8] sm:$0xff] }
  0xd3   :  { %2012 = vst.msk [vmem:[%s2841_s7 + $0xd0] sm:$0xff] %vm30_vm0, %v1979_v27  ;;  %v1922_v34 = vpop.xlane.xlu0 %1921 }
  0xd4   :  { %v1943_v31 = vpop.xlane.xlu1 %1942  ;;  %v1974_v35 = vadd.f32 %v1922_v34, %v1846_v32 }
  0xd5   :  { %v1981_v33 = vadd.f32 %v1943_v31, %v1853_v28 }
  0xd6   :  { %2007 = vst.msk [vmem:[%s2841_s7 + $0xa8] sm:$0xff] %vm30_vm0, %v1974_v35 }
  0xd7   :  { %2014 = vst.msk [vmem:[%s2841_s7 + $0xe0] sm:$0xff] %vm30_vm0, %v1981_v33  ;;  %v1928_v38 = vpop.xlane.xlu0 %1927 }
  0xd8   :  { %v1976_v39 = vadd.f32 %v1928_v38, %v1848_v37 }
  0xda   :  { %2009 = vst.msk [vmem:[%s2841_s7 + $0xb8] sm:$0xff] %vm30_vm0, %v1976_v39 }
  0xdb   :  { %v1934_v42 = vpop.xlane.xlu0 %1933 }
  0xdc   :  { %v1978_v43 = vadd.f32 %v1934_v42, %v1850_v41 }
  0xde   :  { %2011 = vst.msk [vmem:[%s2841_s7 + $0xc8] sm:$0xff] %vm30_vm0, %v1978_v43 }
  0xdf   :  { %v1940_v47 = vpop.xlane.xlu0 %1939 }
  0xe0   :  { %v1980_v48 = vadd.f32 %v1940_v47, %v1852_v45 }
  0xe2   :  { %2013 = vst.msk [vmem:[%s2841_s7 + $0xd8] sm:$0xff] %vm30_vm0, %v1980_v48 }
  0xe3   :  { %v1946_v52 = vpop.xlane.xlu0 %1945 }
  0xe4   :  { %v1982_v53 = vadd.f32 %v1946_v52, %v1854_v50 }
  0xe6   :  { %2015 = vst.msk [vmem:[%s2841_s7 + $0xe8] sm:$0xff] %vm30_vm0, %v1982_v53 }
  0xe7   :  { %v1952_v29 = vpop.xlane.xlu0 %1951 }
  0xe8   :  { %v1984_v31 = vadd.f32 %v1952_v29, %v1856_v30 }
  0xea   :  { %2017 = vst.msk [vmem:[%s2841_s7 + $0xf8] sm:$0xff] %vm30_vm0, %v1984_v31 }
  0xf7   :  { %v193_v60 = vpop.f32.mrb[0].mxu0  ;;  %v289_v61 = vpop.f32.mrb[0].mxu1 }
  0xf8   :  { %384 = vst [vmem:[#allocation2] sm:$0xff] %v193_v60  ;;  %v748_v62 = vsub.f32 1.0, %v193_v60  ;;  %v195_v63 = vpop.f32.mrb[1].mxu0  ;;  %416 = vst [vmem:[#allocation2 + $0x100] sm:$0xff] %v289_v61  ;;  %v291_v51 = vpop.f32.mrb[1].mxu1 }
  0xf9   :  { %385 = vst [vmem:[#allocation2 + $0x8] sm:$0xff] %v195_v63  ;;  %417 = vst [vmem:[#allocation2 + $0x108] sm:$0xff] %v291_v51 }
  0xfa   :  { %v812_v1 = vmul.f32 2.0, %v748_v62 }
  0xfb   :  { %v199_v3 = vpop.f32.mrb[2].mxu0  ;;  %v295_v4 = vpop.f32.mrb[2].mxu1 }
  0xfc   :  { %v877_v5 = vmul.f32 %v2095_v0, %v812_v1  ;;  %386 = vst [vmem:[#allocation2 + $0x10] sm:$0xff] %v199_v3  ;;  %418 = vst [vmem:[#allocation2 + $0x110] sm:$0xff] %v295_v4  ;;  %v201_v6 = vpop.f32.mrb[3].mxu0  ;;  %v297_v8 = vpop.f32.mrb[3].mxu1 }
  0xfd   :  { %387 = vst [vmem:[#allocation2 + $0x18] sm:$0xff] %v201_v6  ;;  %419 = vst [vmem:[#allocation2 + $0x118] sm:$0xff] %v297_v8 }
  0xfe   :  { %v1132_v9 = vadd.f32 %v1005_v2, %v877_v5 }
  0xff   :  { %v205_v10 = vpop.f32.mrb[4].mxu0  ;;  %v301_v11 = vpop.f32.mrb[4].mxu1 }
 0x100   :  { %v1761_v57 = vsel %vm1697_vm5, %v1132_v9, 0.0  ;;  %388 = vst [vmem:[#allocation2 + $0x20] sm:$0xff] %v205_v10  ;;  %420 = vst [vmem:[#allocation2 + $0x120] sm:$0xff] %v301_v11  ;;  %v207_v12 = vpop.f32.mrb[5].mxu0  ;;  %v303_v13 = vpop.f32.mrb[5].mxu1 }
 0x101   :  { %1858 = vadd.xlane.f32.xlu1 %v1761_v57  ;;  %389 = vst [vmem:[#allocation2 + $0x28] sm:$0xff] %v207_v12  ;;  %421 = vst [vmem:[#allocation2 + $0x128] sm:$0xff] %v303_v13 }
 0x103   :  { %v211_v14 = vpop.f32.mrb[6].mxu0  ;;  %v307_v15 = vpop.f32.mrb[6].mxu1 }
 0x104   :  { %390 = vst [vmem:[#allocation2 + $0x30] sm:$0xff] %v211_v14  ;;  %422 = vst [vmem:[#allocation2 + $0x130] sm:$0xff] %v307_v15  ;;  %v213_v16 = vpop.f32.mrb[7].mxu0  ;;  %v309_v17 = vpop.f32.mrb[7].mxu1 }
 0x105   :  { %1948 = vadd.xlane.f32.xlu1 %v2120_v7  ;;  %391 = vst [vmem:[#allocation2 + $0x38] sm:$0xff] %v213_v16  ;;  %423 = vst [vmem:[#allocation2 + $0x138] sm:$0xff] %v309_v17 }
 0x107   :  { %v217_v18 = vpop.f32.mrb[8].mxu0  ;;  %v313_v19 = vpop.f32.mrb[8].mxu1 }
 0x108   :  { %392 = vst [vmem:[#allocation2 + $0x40] sm:$0xff] %v217_v18  ;;  %424 = vst [vmem:[#allocation2 + $0x140] sm:$0xff] %v313_v19  ;;  %v219_v20 = vpop.f32.mrb[9].mxu0  ;;  %v315_v21 = vpop.f32.mrb[9].mxu1 }
 0x109   :  { %393 = vst [vmem:[#allocation2 + $0x48] sm:$0xff] %v219_v20  ;;  %425 = vst [vmem:[#allocation2 + $0x148] sm:$0xff] %v315_v21 }
 0x10b   :  { %v223_v22 = vpop.f32.mrb[10].mxu0  ;;  %v319_v23 = vpop.f32.mrb[10].mxu1 }
 0x10c   :  { %394 = vst [vmem:[#allocation2 + $0x50] sm:$0xff] %v223_v22  ;;  %426 = vst [vmem:[#allocation2 + $0x150] sm:$0xff] %v319_v23  ;;  %v225_v24 = vpop.f32.mrb[11].mxu0  ;;  %v321_v25 = vpop.f32.mrb[11].mxu1 }
 0x10d   :  { %395 = vst [vmem:[#allocation2 + $0x58] sm:$0xff] %v225_v24  ;;  %427 = vst [vmem:[#allocation2 + $0x158] sm:$0xff] %v321_v25 }
 0x10f   :  { %v229_v26 = vpop.f32.mrb[12].mxu0  ;;  %v325_v7 = vpop.f32.mrb[12].mxu1 }
 0x110   :  { %396 = vst [vmem:[#allocation2 + $0x60] sm:$0xff] %v229_v26  ;;  %428 = vst [vmem:[#allocation2 + $0x160] sm:$0xff] %v325_v7  ;;  %v231_v27 = vpop.f32.mrb[13].mxu0  ;;  %v327_v28 = vpop.f32.mrb[13].mxu1 }
 0x111   :  { %397 = vst [vmem:[#allocation2 + $0x68] sm:$0xff] %v231_v27  ;;  %429 = vst [vmem:[#allocation2 + $0x168] sm:$0xff] %v327_v28 }
 0x113   :  { %v235_v32 = vpop.f32.mrb[14].mxu0  ;;  %v331_v33 = vpop.f32.mrb[14].mxu1 }
 0x114   :  { %398 = vst [vmem:[#allocation2 + $0x70] sm:$0xff] %v235_v32  ;;  %430 = vst [vmem:[#allocation2 + $0x170] sm:$0xff] %v331_v33  ;;  %v237_v34 = vpop.f32.mrb[15].mxu0  ;;  %v333_v35 = vpop.f32.mrb[15].mxu1 }
 0x115   :  { %399 = vst [vmem:[#allocation2 + $0x78] sm:$0xff] %v237_v34  ;;  %431 = vst [vmem:[#allocation2 + $0x178] sm:$0xff] %v333_v35 }
 0x117   :  { %v241_v36 = vpop.f32.mrb[16].mxu0  ;;  %v337_v37 = vpop.f32.mrb[16].mxu1 }
 0x118   :  { %400 = vst [vmem:[#allocation2 + $0x80] sm:$0xff] %v241_v36  ;;  %432 = vst [vmem:[#allocation2 + $0x180] sm:$0xff] %v337_v37  ;;  %v243_v38 = vpop.f32.mrb[17].mxu0  ;;  %v339_v39 = vpop.f32.mrb[17].mxu1 }
 0x119   :  { %401 = vst [vmem:[#allocation2 + $0x88] sm:$0xff] %v243_v38  ;;  %433 = vst [vmem:[#allocation2 + $0x188] sm:$0xff] %v339_v39 }
 0x11b   :  { %v247_v40 = vpop.f32.mrb[18].mxu0  ;;  %v343_v41 = vpop.f32.mrb[18].mxu1 }
 0x11c   :  { %402 = vst [vmem:[#allocation2 + $0x90] sm:$0xff] %v247_v40  ;;  %434 = vst [vmem:[#allocation2 + $0x190] sm:$0xff] %v343_v41  ;;  %v249_v42 = vpop.f32.mrb[19].mxu0  ;;  %v345_v43 = vpop.f32.mrb[19].mxu1 }
 0x11d   :  { %403 = vst [vmem:[#allocation2 + $0x98] sm:$0xff] %v249_v42  ;;  %435 = vst [vmem:[#allocation2 + $0x198] sm:$0xff] %v345_v43 }
 0x11f   :  { %v253_v44 = vpop.f32.mrb[20].mxu0  ;;  %v349_v45 = vpop.f32.mrb[20].mxu1 }
 0x120   :  { %404 = vst [vmem:[#allocation2 + $0xa0] sm:$0xff] %v253_v44  ;;  %436 = vst [vmem:[#allocation2 + $0x1a0] sm:$0xff] %v349_v45  ;;  %v255_v46 = vpop.f32.mrb[21].mxu0  ;;  %v351_v47 = vpop.f32.mrb[21].mxu1 }
 0x121   :  { %405 = vst [vmem:[#allocation2 + $0xa8] sm:$0xff] %v255_v46  ;;  %437 = vst [vmem:[#allocation2 + $0x1a8] sm:$0xff] %v351_v47 }
 0x123   :  { %v259_v48 = vpop.f32.mrb[22].mxu0  ;;  %v355_v49 = vpop.f32.mrb[22].mxu1 }
 0x124   :  { %406 = vst [vmem:[#allocation2 + $0xb0] sm:$0xff] %v259_v48  ;;  %438 = vst [vmem:[#allocation2 + $0x1b0] sm:$0xff] %v355_v49  ;;  %v261_v50 = vpop.f32.mrb[23].mxu0  ;;  %v357_v52 = vpop.f32.mrb[23].mxu1 }
 0x125   :  { %407 = vst [vmem:[#allocation2 + $0xb8] sm:$0xff] %v261_v50  ;;  %439 = vst [vmem:[#allocation2 + $0x1b8] sm:$0xff] %v357_v52 }
 0x127   :  { %v265_v53 = vpop.f32.mrb[24].mxu0  ;;  %v361_v54 = vpop.f32.mrb[24].mxu1 }
 0x128   :  { %408 = vst [vmem:[#allocation2 + $0xc0] sm:$0xff] %v265_v53  ;;  %440 = vst [vmem:[#allocation2 + $0x1c0] sm:$0xff] %v361_v54  ;;  %v267_v55 = vpop.f32.mrb[25].mxu0  ;;  %v363_v56 = vpop.f32.mrb[25].mxu1 }
 0x129   :  { %409 = vst [vmem:[#allocation2 + $0xc8] sm:$0xff] %v267_v55  ;;  %441 = vst [vmem:[#allocation2 + $0x1c8] sm:$0xff] %v363_v56 }
 0x12b   :  { %v271_v58 = vpop.f32.mrb[26].mxu0  ;;  %v367_v59 = vpop.f32.mrb[26].mxu1 }
 0x12c   :  { %410 = vst [vmem:[#allocation2 + $0xd0] sm:$0xff] %v271_v58  ;;  %442 = vst [vmem:[#allocation2 + $0x1d0] sm:$0xff] %v367_v59  ;;  %v273_v60 = vpop.f32.mrb[27].mxu0  ;;  %v369_v61 = vpop.f32.mrb[27].mxu1 }
 0x12d   :  { %411 = vst [vmem:[#allocation2 + $0xd8] sm:$0xff] %v273_v60  ;;  %443 = vst [vmem:[#allocation2 + $0x1d8] sm:$0xff] %v369_v61 }
 0x12f   :  { %v277_v62 = vpop.f32.mrb[28].mxu0  ;;  %v373_v63 = vpop.f32.mrb[28].mxu1 }
 0x130   :  { %412 = vst [vmem:[#allocation2 + $0xe0] sm:$0xff] %v277_v62  ;;  %444 = vst [vmem:[#allocation2 + $0x1e0] sm:$0xff] %v373_v63  ;;  %v375_v51 = vpop.f32.mrb[29].mxu1  ;;  %v279_v0 = vpop.f32.mrb[29].mxu0 }
 0x131   :  { %445 = vst [vmem:[#allocation2 + $0x1e8] sm:$0xff] %v375_v51  ;;  %413 = vst [vmem:[#allocation2 + $0xe8] sm:$0xff] %v279_v0 }
 0x133   :  { %v283_v1 = vpop.f32.mrb[30].mxu0  ;;  %v379_v2 = vpop.f32.mrb[30].mxu1 }
 0x134   :  { %414 = vst [vmem:[#allocation2 + $0xf0] sm:$0xff] %v283_v1  ;;  %446 = vst [vmem:[#allocation2 + $0x1f0] sm:$0xff] %v379_v2  ;;  %v381_v3 = vpop.f32.mrb[31].mxu1  ;;  %v285_v4 = vpop.f32.mrb[31].mxu0 }
 0x135   :  { %447 = vst [vmem:[#allocation2 + $0x1f8] sm:$0xff] %v381_v3  ;;  %415 = vst [vmem:[#allocation2 + $0xf8] sm:$0xff] %v285_v4 }
 0x136   :  { %2107 = shalt.err (!%p2104_p4)
}
 0x137   :  { %s2108_s9 = scalar_lea.hbm %s2840_s6, 8192 }
 0x138   :  { %p2109_p5 = scmp.ne.s32.totalorder %s2840_s6, %s2108_s9  ;;  %p2112_p6 = scmp.lt.u32.totalorder %s2108_s9, %s2840_s6 }
 0x13a   :  { %p2114_p7 = pnand %p2112_p6, %p2109_p5 }
 0x13c   :  { %2117 = shalt.err (!%p2114_p7)
}
 0x13d   :  { %s2123_s13 = smov 256   ;;  %s2124_s14 = smov 16   ;;  %v1825_v5 = vld [vmem:[%s2841_s7] sm:$0xff]  ;;  %v1855_v9 = vld [vmem:[%s2841_s7 + $0xf0] sm:$0xff] }
 0x13e   :  { %2029 = dma.vmem_to_hbm [thread:$0]  %s2024_s29, 8192, %s2840_s6, [#allocation3], %s2123_s13, %s2123_s13, %s2124_s14  }
 0x18e   :  { %v1859_v6 = vpop.xlane.xlu1 %1858 }
 0x18f   :  { %v1953_v8 = vadd.f32 %v1859_v6, %v1825_v5 }
 0x191   :  { %1986 = vst.msk [vmem:[%s2841_s7] sm:$0xff] %vm30_vm0, %v1953_v8 }
 0x192   :  { %v1949_v10 = vpop.xlane.xlu1 %1948 }
 0x193   :  { %v1983_v11 = vadd.f32 %v1949_v10, %v1855_v9 }
 0x195   :  { %2016 = vst.msk [vmem:[%s2841_s7 + $0xf0] sm:$0xff] %vm30_vm0, %v1983_v11 }
 0x196   :  { %2118 = dma.done.wait [#allocation3], 8192  }
 0x197   :  { %2119 = vsyncadd [#allocation3], 4294959104 }
 0x198   :  { %2037 = vsyncpa [#allocation3], 1 }

</bundles_post_ra>
